<compile_context>
chip_gen: v5e
topology: v5e:2x2
jax: 0.10.0
libtpu: 0.0.40
codegen_flags: <defaults>
</compile_context>

<pallas_src>
import functools

import jax
import jax.numpy as jnp
import numpy as np
from jax.experimental import pallas as pl
from jax.experimental.pallas import tpu as pltpu


def _attn_local_aug_kernel(fine_ref, coarse_ref, motif_ref,
                           wq_ref, wk_ref, wv_ref, wo_ref, bo_ref,
                           e_ref, et_ref, out_ref, *, inv_dk):
    tb = fine_ref.shape[0]

    fine = fine_ref[...]      # [TB, H]
    coarse = coarse_ref[...]  # [TB, H]
    motif = motif_ref[...]    # [TB, H]

    # --- Projections (MXU). Fuse K and V over the two "keys" by stacking
    # [fine; coarse] along sublanes: one push each instead of two. ---
    kv_in = jnp.concatenate([fine, coarse], axis=0)                        # [2*TB, H]
    q = jnp.dot(motif, wq_ref[...], preferred_element_type=jnp.float32)    # [TB, H]
    k = jnp.dot(kv_in, wk_ref[...], preferred_element_type=jnp.float32)    # [2*TB, H]
    v = jnp.dot(kv_in, wv_ref[...], preferred_element_type=jnp.float32)    # [2*TB, H]

    kf = k[:tb, :]   # key 0 (fine)    -- sublane-aligned slices only
    kc = k[tb:, :]   # key 1 (coarse)
    vf = v[:tb, :]
    vc = v[tb:, :]

    # --- Per-head score difference, lane-dense: (s_f - s_c)[b, h] =
    #     sum_{j in head h} q[b, j] * (kf - kc)[b, j]  ==  (q*(kf-kc)) @ E,
    # with E the static 0/1 block matrix [H, heads] (MXU reduce, no XLU sums). ---
    s_diff = jnp.dot(q * (kf - kc), e_ref[...],
                     preferred_element_type=jnp.float32)                   # [TB, heads]

    # --- Exact 2-way softmax as a sigmoid of the scaled score difference. ---
    p_f = 1.0 / (1.0 + jnp.exp(-(s_diff * inv_dk)))                        # [TB, heads]

    # --- Broadcast per-head prob back to lane-dense [TB, H] and blend V:
    #     out = p_f * vf + (1 - p_f) * vc = vc + p_f * (vf - vc). ---
    p_full = jnp.dot(p_f, et_ref[...], preferred_element_type=jnp.float32)  # [TB, H]
    attn = vc + p_full * (vf - vc)                                          # [TB, H]

    out = jnp.dot(attn, wo_ref[...], preferred_element_type=jnp.float32) + bo_ref[...]
    out_ref[...] = out.astype(out_ref.dtype)


def prepare_params(params, heads):
    """One-time packing: transpose PyTorch [out,in] weights and build the head
    block matrix E [H, heads] (E[j, h] = 1 iff lane j belongs to head h)."""
    H = params["Wq"].shape[0]
    assert H % heads == 0
    d_k = H // heads
    e = np.zeros((H, heads), dtype=np.float32)
    for h in range(heads):
        e[h * d_k:(h + 1) * d_k, h] = 1.0
    return {
        "wq_t": jnp.asarray(params["Wq"]).T,
        "wk_t": jnp.asarray(params["Wk"]).T,
        "wv_t": jnp.asarray(params["Wv"]).T,
        "wo_t": jnp.asarray(params["Wo"]).T,
        "bo": jnp.asarray(params["bo"]).reshape(1, H),
        "e": jnp.asarray(e),
        "e_t": jnp.asarray(e.T),
    }


def attn_local_augmentation(fine, coarse, motif, packed, heads, *, block_b=256):
    """fine/coarse/motif: [B, H] float32. packed: output of prepare_params()."""
    B, H = fine.shape
    assert H % heads == 0
    d_k = H // heads

    # Sublane-aligned batch tile; pad B up to a multiple of it if needed.
    block_b = max(8, (int(min(block_b, B)) // 8) * 8)
    n_tiles = pl.cdiv(B, block_b)
    b_pad = n_tiles * block_b
    if b_pad != B:
        pad = ((0, b_pad - B), (0, 0))
        fine = jnp.pad(fine, pad)
        coarse = jnp.pad(coarse, pad)
        motif = jnp.pad(motif, pad)

    kernel = functools.partial(_attn_local_aug_kernel, inv_dk=1.0 / d_k)

    act_spec = pl.BlockSpec((block_b, H), lambda i: (i, 0))
    w_spec = pl.BlockSpec((H, H), lambda i: (0, 0))
    b_spec = pl.BlockSpec((1, H), lambda i: (0, 0))
    e_spec = pl.BlockSpec((H, heads), lambda i: (0, 0))
    et_spec = pl.BlockSpec((heads, H), lambda i: (0, 0))

    out = pl.pallas_call(
        kernel,
        out_shape=jax.ShapeDtypeStruct((b_pad, H), jnp.float32),
        grid_spec=pl.GridSpec(
            grid=(n_tiles,),
            in_specs=[act_spec, act_spec, act_spec,
                      w_spec, w_spec, w_spec, w_spec,
                      b_spec, e_spec, et_spec],
            out_specs=act_spec,
        ),
        compiler_params=pltpu.CompilerParams(dimension_semantics=("parallel",)),
    )(fine, coarse, motif,
      packed["wq_t"], packed["wk_t"], packed["wv_t"], packed["wo_t"],
      packed["bo"], packed["e"], packed["e_t"])

    return out[:B] if b_pad != B else out


def ref_forward(fine, coarse, motif, params, heads):
    """Pure-JAX reference mirroring the PyTorch forward exactly."""
    B, H = fine.shape
    d_k = H // heads
    Q = motif @ params["Wq"].T                               # [B, H]
    KV_in = jnp.stack([fine, coarse], axis=1)                # [B, 2, H]
    K = KV_in @ params["Wk"].T                               # [B, 2, H]
    V = KV_in @ params["Wv"].T                               # [B, 2, H]
    Qh = Q.reshape(B, 1, heads, d_k).transpose(0, 2, 1, 3)   # [B, heads, 1, d_k]
    Kh = K.reshape(B, 2, heads, d_k).transpose(0, 2, 1, 3)   # [B, heads, 2, d_k]
    Vh = V.reshape(B, 2, heads, d_k).transpose(0, 2, 1, 3)   # [B, heads, 2, d_k]
    s = jnp.einsum("bhqd,bhkd->bhqk", Qh, Kh) / d_k          # [B, heads, 1, 2]
    p = jax.nn.softmax(s, axis=-1)
    o = jnp.einsum("bhqk,bhkd->bhqd", p, Vh)                 # [B, heads, 1, d_k]
    o = o.transpose(0, 2, 1, 3).reshape(B, H)
    return o @ params["Wo"].T + params["bo"]


if __name__ == "__main__":
    B, H, HEADS = 64, 32, 4

    key = jax.random.PRNGKey(0)
    k_fine, k_coarse, k_motif, k_wq, k_wk, k_wv, k_wo, k_bo = jax.random.split(key, 8)

    fine = jax.random.normal(k_fine, (B, H), dtype=jnp.float32)
    coarse = jax.random.normal(k_coarse, (B, H), dtype=jnp.float32)
    motif = jax.random.normal(k_motif, (B, H), dtype=jnp.float32)

    # Deterministic synthetic parameters (PyTorch convention: W is [out_features, in_features]).
    scale = 1.0 / np.sqrt(H)
    params = {
        "Wq": jax.random.uniform(k_wq, (H, H), jnp.float32, -scale, scale),
        "Wk": jax.random.uniform(k_wk, (H, H), jnp.float32, -scale, scale),
        "Wv": jax.random.uniform(k_wv, (H, H), jnp.float32, -scale, scale),
        "Wo": jax.random.uniform(k_wo, (H, H), jnp.float32, -scale, scale),
        "bo": jax.random.uniform(k_bo, (H,), jnp.float32, -scale, scale),
    }

    packed = prepare_params(params, HEADS)
    out = attn_local_augmentation(fine, coarse, motif, packed, HEADS, block_b=32)
    out = jax.block_until_ready(out)

    ref = ref_forward(fine, coarse, motif, params, HEADS)
    np.testing.assert_allclose(np.asarray(out), np.asarray(ref), rtol=1e-5, atol=1e-5)

    print("KERNEL_OK")
</pallas_src>

<mosaic_0001>
module attributes {stable_mosaic.version = 11 : i64} {
  func.func @_attn_local_aug_kernel(%arg0: i32, %arg1: memref<32x32xf32, #tpu.memory_space<vmem>>, %arg2: memref<32x32xf32, #tpu.memory_space<vmem>>, %arg3: memref<32x32xf32, #tpu.memory_space<vmem>>, %arg4: memref<32x32xf32, #tpu.memory_space<vmem>>, %arg5: memref<32x32xf32, #tpu.memory_space<vmem>>, %arg6: memref<32x32xf32, #tpu.memory_space<vmem>>, %arg7: memref<32x32xf32, #tpu.memory_space<vmem>>, %arg8: memref<1x32xf32, #tpu.memory_space<vmem>>, %arg9: memref<32x4xf32, #tpu.memory_space<vmem>>, %arg10: memref<4x32xf32, #tpu.memory_space<vmem>>, %arg11: memref<32x32xf32, #tpu.memory_space<vmem>>) attributes {dimension_semantics = [#tpu.dimension_semantics<parallel>], iteration_bounds = array<i64: 2>, scalar_prefetch = 0 : i64, scratch_operands = 0 : i64, tpu.core_type = #tpu.core_type<tc>, window_params = [{transform_indices = @transform_0, window_bounds = array<i64: 32, 32>}, {transform_indices = @transform_1, window_bounds = array<i64: 32, 32>}, {transform_indices = @transform_2, window_bounds = array<i64: 32, 32>}, {pipeline_mode = #tpu.pipeline_mode<synchronous>, transform_indices = @transform_3, window_bounds = array<i64: 32, 32>}, {pipeline_mode = #tpu.pipeline_mode<synchronous>, transform_indices = @transform_4, window_bounds = array<i64: 32, 32>}, {pipeline_mode = #tpu.pipeline_mode<synchronous>, transform_indices = @transform_5, window_bounds = array<i64: 32, 32>}, {pipeline_mode = #tpu.pipeline_mode<synchronous>, transform_indices = @transform_6, window_bounds = array<i64: 32, 32>}, {pipeline_mode = #tpu.pipeline_mode<synchronous>, transform_indices = @transform_7, window_bounds = array<i64: 1, 32>}, {pipeline_mode = #tpu.pipeline_mode<synchronous>, transform_indices = @transform_8, window_bounds = array<i64: 32, 4>}, {pipeline_mode = #tpu.pipeline_mode<synchronous>, transform_indices = @transform_9, window_bounds = array<i64: 4, 32>}, {transform_indices = @transform_10, window_bounds = array<i64: 32, 32>}]} {
    %c0 = arith.constant 0 : index
    %c0_0 = arith.constant 0 : index
    %0 = vector.load %arg1[%c0, %c0_0] : memref<32x32xf32, #tpu.memory_space<vmem>>, vector<32x32xf32>
    %c0_1 = arith.constant 0 : index
    %c0_2 = arith.constant 0 : index
    %1 = vector.load %arg2[%c0_1, %c0_2] : memref<32x32xf32, #tpu.memory_space<vmem>>, vector<32x32xf32>
    %c0_3 = arith.constant 0 : index
    %c0_4 = arith.constant 0 : index
    %2 = vector.load %arg3[%c0_3, %c0_4] : memref<32x32xf32, #tpu.memory_space<vmem>>, vector<32x32xf32>
    %3 = tpu.concatenate %0, %1 in 0 : vector<32x32xf32>, vector<32x32xf32> -> vector<64x32xf32>
    %c0_5 = arith.constant 0 : index
    %c0_6 = arith.constant 0 : index
    %4 = vector.load %arg4[%c0_5, %c0_6] : memref<32x32xf32, #tpu.memory_space<vmem>>, vector<32x32xf32>
    %cst = arith.constant dense<0.000000e+00> : vector<32x32xf32>
    %5 = tpu.matmul %2, %4, %cst {dimension_numbers = #tpu.dot_dimension_numbers<[1], [0], [0], [1], [0, 0, 1, 1], [], []>} : vector<32x32xf32>, vector<32x32xf32>, vector<32x32xf32> -> vector<32x32xf32>
    %c0_7 = arith.constant 0 : index
    %c0_8 = arith.constant 0 : index
    %6 = vector.load %arg5[%c0_7, %c0_8] : memref<32x32xf32, #tpu.memory_space<vmem>>, vector<32x32xf32>
    %cst_9 = arith.constant dense<0.000000e+00> : vector<64x32xf32>
    %7 = tpu.matmul %3, %6, %cst_9 {dimension_numbers = #tpu.dot_dimension_numbers<[1], [0], [0], [1], [0, 0, 1, 1], [], []>} : vector<64x32xf32>, vector<32x32xf32>, vector<64x32xf32> -> vector<64x32xf32>
    %c0_10 = arith.constant 0 : index
    %c0_11 = arith.constant 0 : index
    %8 = vector.load %arg6[%c0_10, %c0_11] : memref<32x32xf32, #tpu.memory_space<vmem>>, vector<32x32xf32>
    %cst_12 = arith.constant dense<0.000000e+00> : vector<64x32xf32>
    %9 = tpu.matmul %3, %8, %cst_12 {dimension_numbers = #tpu.dot_dimension_numbers<[1], [0], [0], [1], [0, 0, 1, 1], [], []>} : vector<64x32xf32>, vector<32x32xf32>, vector<64x32xf32> -> vector<64x32xf32>
    %10 = vector.extract_strided_slice %7 {offsets = [0, 0], sizes = [32, 32], strides = [1, 1]} : vector<64x32xf32> to vector<32x32xf32>
    %11 = vector.extract_strided_slice %7 {offsets = [32, 0], sizes = [32, 32], strides = [1, 1]} : vector<64x32xf32> to vector<32x32xf32>
    %12 = vector.extract_strided_slice %9 {offsets = [0, 0], sizes = [32, 32], strides = [1, 1]} : vector<64x32xf32> to vector<32x32xf32>
    %13 = vector.extract_strided_slice %9 {offsets = [32, 0], sizes = [32, 32], strides = [1, 1]} : vector<64x32xf32> to vector<32x32xf32>
    %14 = arith.subf %10, %11 : vector<32x32xf32>
    %15 = arith.mulf %5, %14 : vector<32x32xf32>
    %c0_13 = arith.constant 0 : index
    %c0_14 = arith.constant 0 : index
    %16 = vector.load %arg9[%c0_13, %c0_14] : memref<32x4xf32, #tpu.memory_space<vmem>>, vector<32x4xf32>
    %cst_15 = arith.constant dense<0.000000e+00> : vector<32x4xf32>
    %17 = tpu.matmul %15, %16, %cst_15 {dimension_numbers = #tpu.dot_dimension_numbers<[1], [0], [0], [1], [0, 0, 1, 1], [], []>} : vector<32x32xf32>, vector<32x4xf32>, vector<32x4xf32> -> vector<32x4xf32>
    %cst_16 = arith.constant 1.250000e-01 : f32
    %18 = vector.broadcast %cst_16 : f32 to vector<32x4xf32>
    %19 = arith.mulf %17, %18 : vector<32x4xf32>
    %cst_17 = arith.constant 0.000000e+00 : f32
    %20 = vector.broadcast %cst_17 : f32 to vector<32x4xf32>
    %21 = arith.subf %20, %19 : vector<32x4xf32>
    %22 = math.exp %21 : vector<32x4xf32>
    %cst_18 = arith.constant 1.000000e+00 : f32
    %23 = vector.broadcast %cst_18 : f32 to vector<32x4xf32>
    %24 = arith.addf %23, %22 : vector<32x4xf32>
    %cst_19 = arith.constant 1.000000e+00 : f32
    %25 = vector.broadcast %cst_19 : f32 to vector<32x4xf32>
    %26 = arith.divf %25, %24 : vector<32x4xf32>
    %c0_20 = arith.constant 0 : index
    %c0_21 = arith.constant 0 : index
    %27 = vector.load %arg10[%c0_20, %c0_21] : memref<4x32xf32, #tpu.memory_space<vmem>>, vector<4x32xf32>
    %cst_22 = arith.constant dense<0.000000e+00> : vector<32x32xf32>
    %28 = tpu.matmul %26, %27, %cst_22 {dimension_numbers = #tpu.dot_dimension_numbers<[1], [0], [0], [1], [0, 0, 1, 1], [], []>} : vector<32x4xf32>, vector<4x32xf32>, vector<32x32xf32> -> vector<32x32xf32>
    %29 = arith.subf %12, %13 : vector<32x32xf32>
    %30 = arith.mulf %28, %29 : vector<32x32xf32>
    %31 = arith.addf %13, %30 : vector<32x32xf32>
    %c0_23 = arith.constant 0 : index
    %c0_24 = arith.constant 0 : index
    %32 = vector.load %arg7[%c0_23, %c0_24] : memref<32x32xf32, #tpu.memory_space<vmem>>, vector<32x32xf32>
    %cst_25 = arith.constant dense<0.000000e+00> : vector<32x32xf32>
    %33 = tpu.matmul %31, %32, %cst_25 {dimension_numbers = #tpu.dot_dimension_numbers<[1], [0], [0], [1], [0, 0, 1, 1], [], []>} : vector<32x32xf32>, vector<32x32xf32>, vector<32x32xf32> -> vector<32x32xf32>
    %c0_26 = arith.constant 0 : index
    %c0_27 = arith.constant 0 : index
    %34 = vector.load %arg8[%c0_26, %c0_27] : memref<1x32xf32, #tpu.memory_space<vmem>>, vector<1x32xf32>
    %35 = vector.broadcast %34 : vector<1x32xf32> to vector<32x32xf32>
    %36 = arith.addf %33, %35 : vector<32x32xf32>
    %c0_28 = arith.constant 0 : index
    %c0_29 = arith.constant 0 : index
    %37 = vector.load %arg11[%c0_28, %c0_29] : memref<32x32xf32, #tpu.memory_space<vmem>>, vector<32x32xf32>
    tpu.vector_store %arg11[%c0_28, %c0_29], %36 {strides = array<i32>} : memref<32x32xf32, #tpu.memory_space<vmem>>, vector<32x32xf32>,
    return
  }
  func.func @transform_0(%arg0: i32) -> (i32, i32) {
    %c0_i32 = arith.constant 0 : i32
    %c0_i32_0 = arith.constant 0 : i32
    return %arg0, %c0_i32 : i32, i32
  }
  func.func @transform_1(%arg0: i32) -> (i32, i32) {
    %c0_i32 = arith.constant 0 : i32
    %c0_i32_0 = arith.constant 0 : i32
    return %arg0, %c0_i32 : i32, i32
  }
  func.func @transform_2(%arg0: i32) -> (i32, i32) {
    %c0_i32 = arith.constant 0 : i32
    %c0_i32_0 = arith.constant 0 : i32
    return %arg0, %c0_i32 : i32, i32
  }
  func.func @transform_3(%arg0: i32) -> (i32, i32) {
    %c0_i32 = arith.constant 0 : i32
    %c0_i32_0 = arith.constant 0 : i32
    %c0_i32_1 = arith.constant 0 : i32
    return %c0_i32, %c0_i32_0 : i32, i32
  }
  func.func @transform_4(%arg0: i32) -> (i32, i32) {
    %c0_i32 = arith.constant 0 : i32
    %c0_i32_0 = arith.constant 0 : i32
    %c0_i32_1 = arith.constant 0 : i32
    return %c0_i32, %c0_i32_0 : i32, i32
  }
  func.func @transform_5(%arg0: i32) -> (i32, i32) {
    %c0_i32 = arith.constant 0 : i32
    %c0_i32_0 = arith.constant 0 : i32
    %c0_i32_1 = arith.constant 0 : i32
    return %c0_i32, %c0_i32_0 : i32, i32
  }
  func.func @transform_6(%arg0: i32) -> (i32, i32) {
    %c0_i32 = arith.constant 0 : i32
    %c0_i32_0 = arith.constant 0 : i32
    %c0_i32_1 = arith.constant 0 : i32
    return %c0_i32, %c0_i32_0 : i32, i32
  }
  func.func @transform_7(%arg0: i32) -> (i32, i32) {
    %c0_i32 = arith.constant 0 : i32
    %c0_i32_0 = arith.constant 0 : i32
    %c0_i32_1 = arith.constant 0 : i32
    return %c0_i32, %c0_i32_0 : i32, i32
  }
  func.func @transform_8(%arg0: i32) -> (i32, i32) {
    %c0_i32 = arith.constant 0 : i32
    %c0_i32_0 = arith.constant 0 : i32
    %c0_i32_1 = arith.constant 0 : i32
    return %c0_i32, %c0_i32_0 : i32, i32
  }
  func.func @transform_9(%arg0: i32) -> (i32, i32) {
    %c0_i32 = arith.constant 0 : i32
    %c0_i32_0 = arith.constant 0 : i32
    %c0_i32_1 = arith.constant 0 : i32
    return %c0_i32, %c0_i32_0 : i32, i32
  }
  func.func @transform_10(%arg0: i32) -> (i32, i32) {
    %c0_i32 = arith.constant 0 : i32
    %c0_i32_0 = arith.constant 0 : i32
    return %arg0, %c0_i32 : i32, i32
  }
}

</mosaic_0001>

<bundles_post_ra>
// kernel: tpu_custom_call.1
= control target key start
LH: loop header
LB: loop body
LE: loop exit
PB: predicated region body
PF: predicated region fallthrough
CT: control target
= control target key end

     0   :  { %s1040_s13 = smov 0   ;;  %s1171_s0 = inlined_call_operand.vmem [shape: f32[64,32], index: 0, kind: input, shape index: {}]   ;;  %s1172_s1 = inlined_call_operand.vmem [shape: f32[64,32], index: 1, kind: input, shape index: {}]   ;;  %s1173_s2 = inlined_call_operand.vmem [shape: f32[64,32], index: 2, kind: input, shape index: {}]   ;;  %s1174_s3 = inlined_call_operand.vmem [shape: f32[32,32], index: 3, kind: input, shape index: {}]   ;;  %s1175_s4 = inlined_call_operand.vmem [shape: f32[32,32], index: 4, kind: input, shape index: {}]   ;;  %s1176_s5 = inlined_call_operand.vmem [shape: f32[32,32], index: 5, kind: input, shape index: {}]   ;;  %s1177_s6 = inlined_call_operand.vmem [shape: f32[32,32], index: 6, kind: input, shape index: {}]   ;;  %s1178_s7 = inlined_call_operand.vmem [shape: f32[1,32], index: 7, kind: input, shape index: {}]   ;;  %s1179_s8 = inlined_call_operand.vmem [shape: f32[32,4], index: 8, kind: input, shape index: {}]   ;;  %s1180_s9 = inlined_call_operand.vmem [shape: f32[4,32], index: 9, kind: input, shape index: {}]   ;;  %s1181_s10 = inlined_call_operand.vmem [shape: f32[64,32], index: 10, kind: output, shape index: {}]  }
   0x1 LB: > { %s904_s14 = sadd.s32 4294967295, %s983_s13   ;;  %p908_p0 = scmp.ge.s32.totalorder %s983_s13, 1  ;;  %s983_s13 = sphi %s1040_s13, %s20_s13  }
   0x2   : > { %p335_p1 = scmp.lt.s32.totalorder %s983_s13, 3 }
   0x4   : > { %p336_p2 = pnand %p908_p0, %p335_p1 }
   0x5   : > { %s909_s19 = sshll.u32 (!%p336_p2), %s904_s14, 2 }
   0x6   : > { %339 = sbr.rel (%p336_p2) target bundleno = 634 (0x27a), region = 60  ;;  %p384_p3 = scmp.lt.s32.totalorder (!%p336_p2), %s909_s19, 7 }
   0xb   : > { %v468_v0 = vld [vmem:[%s1175_s4 + $0x18] sm:$0xff]  ;;  %v467_v1 = vld [vmem:[%s1175_s4 + $0x10] sm:$0xff]  ;;  %v466_v4 = vld [vmem:[%s1175_s4 + $0x8] sm:$0xff]  ;;  %s1183_s19 = smov (!%p384_p3, %s909_s19), 7  ;;  %vm423_vm0 = vcmask 261120   ;;  %vm726_vm1 = vcmask 1043456  }
   0xc   : > { %505 = vmatpush.msra.mxu1 %v468_v0  ;;  %v422_v2 = vld [vmem:[%s1174_s3 + $0x18] sm:$0xff]  ;;  %v421_v3 = vld [vmem:[%s1174_s3 + $0x10] sm:$0xff]  ;;  %v420_v5 = vld [vmem:[%s1174_s3 + $0x8] sm:$0xff]  ;;  %s1069_s30 = sshll.u32 %s1183_s19, 3  ;;  %vm713_vm5 = vcmask 31744  }
   0xd   : > { %448 = vmatpush.msra.mxu0 %v422_v2  ;;  %v465_v6 = vld [vmem:[%s1175_s4] sm:$0xff]  ;;  %s387_s14 = scalar_lea.vmem %s1171_s0, %s1069_s30  ;;  %s399_s17 = scalar_lea.vmem %s1173_s2, %s1069_s30  ;;  %v590_v20 = vld [vmem:[%s1179_s8 + $0x18] sm:$0xff]  ;;  %v589_v21 = vld [vmem:[%s1179_s8 + $0x10] sm:$0xff] }
   0xe   : > { %506 = vmatpush.msra.mxu1 %v467_v1  ;;  %v407_v7 = vld [vmem:[%s387_s14] sm:$0xff]  ;;  %v408_v10 = vld [vmem:[%s387_s14 + $0x8] sm:$0xff]  ;;  %v409_v12 = vld [vmem:[%s387_s14 + $0x10] sm:$0xff]  ;;  %s393_s22 = scalar_lea.vmem %s1172_s1, %s1069_s30  ;;  %615 = vmatpush.msra.mxu3 %v590_v20 }
   0xf   : > { %449 = vmatpush.msra.mxu0 %v421_v3  ;;  %v419_v8 = vld [vmem:[%s1174_s3] sm:$0xff]  ;;  %v416_v11 = vld [vmem:[%s399_s17 + $0x8] sm:$0xff]  ;;  %v417_v13 = vld [vmem:[%s399_s17 + $0x10] sm:$0xff] }
  0x10   : > { %507 = vmatpush.msra.mxu1 %v466_v4  ;;  %v415_v9 = vld [vmem:[%s399_s17] sm:$0xff]  ;;  %v410_v14 = vld [vmem:[%s387_s14 + $0x18] sm:$0xff]  ;;  %v412_v17 = vld [vmem:[%s393_s22 + $0x8] sm:$0xff]  ;;  %616 = vmatpush.msra.mxu3 %v589_v21 }
  0x11   : > { %450 = vmatpush.msra.mxu0 %v420_v5  ;;  %v418_v15 = vld [vmem:[%s399_s17 + $0x18] sm:$0xff]  ;;  %v411_v16 = vld [vmem:[%s393_s22] sm:$0xff]  ;;  %v413_v18 = vld [vmem:[%s393_s22 + $0x10] sm:$0xff]  ;;  %s405_s17 = scalar_lea.vmem %s1181_s10, %s1069_s30 }
  0x12   : > { %508 = vmatpush.msra.mxu1 %v465_v6  ;;  %v414_v19 = vld [vmem:[%s393_s22 + $0x18] sm:$0xff]  ;;  %v588_v23 = vld [vmem:[%s1179_s8 + $0x8] sm:$0xff]  ;;  %v587_v24 = vld [vmem:[%s1179_s8] sm:$0xff] }
  0x13   : > { %921 = vmatmul.msk.f32.vlgmr.msra.gmra.mxu1 %vm423_vm0, %v407_v7  ;;  %451 = vmatpush.msra.mxu0 %v419_v8  ;;  %v537_v29 = vld [vmem:[%s1176_s5 + $0x18] sm:$0xff]  ;;  %v536_v30 = vld [vmem:[%s1176_s5 + $0x10] sm:$0xff]  ;;  %v535_v31 = vld [vmem:[%s1176_s5 + $0x8] sm:$0xff] }
  0x14   : > { %917 = vmatmul.msk.f32.vlgmr.msra.gmra.mxu0 %vm423_vm0, %v415_v9  ;;  %617 = vmatpush.msra.mxu3 %v588_v23  ;;  %v534_v34 = vld [vmem:[%s1176_s5] sm:$0xff] }
  0x15   : > { %550 = vmatpush.msra.mxu2 %v537_v29  ;;  %v712_v48 = vld [vmem:[%s1180_s9] sm:$0xf] }
  0x16   : > { %618 = vmatpush.msra.mxu3 %v587_v24  ;;  %941 = vmatpush.msk.msrb.mxu0 %vm726_vm1, %v712_v48 }
  0x17   : > { %551 = vmatpush.msra.mxu2 %v536_v30 }
  0x19   : > { %552 = vmatpush.msra.mxu2 %v535_v31 }
  0x1b   : > { %922 = vmatmul.msk.f32.gmra.mxu1 %vm423_vm0, %v408_v10  ;;  %553 = vmatpush.msra.mxu2 %v534_v34 }
  0x1c   : > { %918 = vmatmul.msk.f32.gmra.mxu0 %vm423_vm0, %v416_v11  ;;  %929 = vmatmul.msk.f32.vlgmr.msra.gmra.mxu2 %vm423_vm0, %v407_v7  ;;  %v774_v7 = vld [vmem:[%s1177_s6 + $0x18] sm:$0xff] }
  0x1d   : > { %803 = vmatpush.msrb.mxu3 %v774_v7 }
  0x23   : > { %923 = vmatmul.msk.f32.gmra.mxu1 %vm423_vm0, %v409_v12 }
  0x24   : > { %919 = vmatmul.msk.f32.gmra.mxu0 %vm423_vm0, %v417_v13  ;;  %930 = vmatmul.msk.f32.gmra.mxu2 %vm423_vm0, %v408_v10 }
  0x2b   : > { %924 = vmatmul.msk.f32.gmra.mxu1 %vm423_vm0, %v410_v14 }
  0x2c   : > { %920 = vmatmul.msk.f32.gmra.mxu0 %vm423_vm0, %v418_v15  ;;  %931 = vmatmul.msk.f32.gmra.mxu2 %vm423_vm0, %v409_v12 }
  0x33   : > { %925 = vmatmul.msk.f32.gmra.mxu1 %vm423_vm0, %v411_v16 }
  0x34   : > { %932 = vmatmul.msk.f32.gmra.mxu2 %vm423_vm0, %v410_v14 }
  0x3b   : > { %926 = vmatmul.msk.f32.gmra.mxu1 %vm423_vm0, %v412_v17 }
  0x3c   : > { %933 = vmatmul.msk.f32.gmra.mxu2 %vm423_vm0, %v411_v16 }
  0x43   : > { %927 = vmatmul.msk.f32.gmra.mxu1 %vm423_vm0, %v413_v18 }
  0x44   : > { %934 = vmatmul.msk.f32.gmra.mxu2 %vm423_vm0, %v412_v17 }
  0x4b   : > { %928 = vmatmul.msk.f32.gmra.mxu1 %vm423_vm0, %v414_v19 }
  0x4c   : > { %935 = vmatmul.msk.f32.gmra.mxu2 %vm423_vm0, %v413_v18 }
  0x54   : > { %936 = vmatmul.msk.f32.gmra.mxu2 %vm423_vm0, %v414_v19 }
  0x90   : > { %v510_v22 = vpop.f32.mrf.mxu1 }
  0x91   : > { %v453_v28 = vpop.f32.mrf.mxu0 }
  0x98   : > { %v513_v25 = vpop.f32.mrf.mxu1 }
  0x99   : > { %v456_v36 = vpop.f32.mrf.mxu0 }
  0xa0   : > { %v516_v26 = vpop.f32.mrf.mxu1 }
  0xa1   : > { %v459_v40 = vpop.f32.mrf.mxu0 }
  0xa8   : > { %v519_v27 = vpop.f32.mrf.mxu1 }
  0xa9   : > { %v462_v45 = vpop.f32.mrf.mxu0 }
  0xb0   : > { %v522_v32 = vpop.f32.mrf.mxu1 }
  0xb1   : > { %v579_v33 = vsub.f32 %v510_v22, %v522_v32  ;;  %v773_v22 = vld [vmem:[%s1177_s6 + $0x10] sm:$0xff] }
  0xb2   : > { %804 = vmatpush.msrb.mxu3 %v773_v22 }
  0xb3   : > { %v583_v35 = vmul.f32 %v579_v33, %v453_v28 }
  0xb5   : > { %937 = vmatmul.msk.f32.vlgmr.msra.gmra.mxu3 %vm423_vm0, %v583_v35  ;;  %v772_v35 = vld [vmem:[%s1177_s6 + $0x8] sm:$0xff] }
  0xb6   : > { %805 = vmatpush.msrb.mxu3 %v772_v35 }
  0xb8   : > { %v525_v37 = vpop.f32.mrf.mxu1 }
  0xb9   : > { %v580_v38 = vsub.f32 %v513_v25, %v525_v37 }
  0xbb   : > { %v584_v39 = vmul.f32 %v580_v38, %v456_v36 }
  0xbd   : > { %938 = vmatmul.msk.f32.gmra.mxu3 %vm423_vm0, %v584_v39 }
  0xc0   : > { %v528_v41 = vpop.f32.mrf.mxu1 }
  0xc1   : > { %v581_v42 = vsub.f32 %v516_v26, %v528_v41 }
  0xc3   : > { %v585_v43 = vmul.f32 %v581_v42, %v459_v40 }
  0xc5   : > { %939 = vmatmul.msk.f32.gmra.mxu3 %vm423_vm0, %v585_v43 }
  0xc8   : > { %v531_v44 = vpop.f32.mrf.mxu1 }
  0xc9   : > { %v582_v46 = vsub.f32 %v519_v27, %v531_v44 }
  0xcb   : > { %v586_v47 = vmul.f32 %v582_v46, %v462_v45  ;;  %v771_v46 = vld [vmem:[%s1177_s6] sm:$0xff] }
  0xcc   : > { %806 = vmatpush.msrb.mxu3 %v771_v46 }
  0xcd   : > { %940 = vmatmul.msk.f32.gmra.mxu3 %vm423_vm0, %v586_v47 }
 0x138   : > { %v620_v49 = vpop.f32.mrf.mxu3 }
 0x139   : > { %v632_v50 = vmul.f32 0.125, %v620_v49 }
 0x13b   : > { %v636_v51 = vsub.f32 0.0, %v632_v50 }
 0x13d   : > { %v640_v52 = vmul.f32 1.442695, %v636_v51 }
 0x13f   : > { %961 = vpow2.f32 %v640_v52 }
 0x140   : > { %v623_v53 = vpop.f32.mrf.mxu3 }
 0x141   : > { %v633_v54 = vmul.f32 0.125, %v623_v53  ;;  %v555_v53 = vpop.f32.mrf.mxu2 }
 0x143   : > { %v637_v55 = vsub.f32 0.0, %v633_v54 }
 0x145   : > { %v962_v56 = vpop.eup %961  ;;  %v642_v57 = vmul.f32 1.442695, %v637_v55 }
 0x146   : > { %v648_v58 = vadd.f32 1.0, %v962_v56 }
 0x147   : > { %963 = vpow2.f32 %v642_v57 }
 0x148   : > { %965 = vrcp.f32 %v648_v58  ;;  %v626_v59 = vpop.f32.mrf.mxu3  ;;  %v663_v6 = vand.u32 2147483648, %v648_v58  ;;  %v661_v10 = vand.u32 2147483647, %v648_v58  ;;  %vm657_vm3 = vweird.f32 %v648_v58 }
 0x149   : > { %v634_v60 = vmul.f32 0.125, %v626_v59  ;;  %v558_v54 = vpop.f32.mrf.mxu2 }
 0x14a   : > { %v664_v16 = vor.u32 1.1754944e-38, %v663_v6  ;;  %vm662_vm6 = vcmp.eq.f32.partialorder %v661_v10, 8.507059e+37 }
 0x14b   : > { %v638_v61 = vsub.f32 0.0, %v634_v60 }
 0x14d   : > { %v964_v62 = vpop.eup %963  ;;  %v644_v63 = vmul.f32 1.442695, %v638_v61 }
 0x14e   : > { %v966_v0 = vpop.eup %965  ;;  %v649_v1 = vadd.f32 1.0, %v964_v62 }
 0x14f   : > { %967 = vpow2.f32 %v644_v63  ;;  %v653_v2 = vmul.f32 %v966_v0, %v648_v58  ;;  %vm658_vm2 = vweird.f32 %v966_v0 }
 0x150   : > { %969 = vrcp.f32 %v649_v1  ;;  %v629_v3 = vpop.f32.mrf.mxu3  ;;  %vm659_vm4 = vmor %vm657_vm3, %vm658_vm2  ;;  %v678_v21 = vand.u32 2147483648, %v649_v1  ;;  %v676_v24 = vand.u32 2147483647, %v649_v1  ;;  %vm672_vm8 = vweird.f32 %v649_v1 }
 0x151   : > { %v635_v4 = vmul.f32 0.125, %v629_v3  ;;  %v654_v5 = vsub.f32 1.0, %v653_v2  ;;  %v561_v55 = vpop.f32.mrf.mxu2 }
 0x152   : > { %v679_v29 = vor.u32 1.1754944e-38, %v678_v21  ;;  %vm677_vm10 = vcmp.eq.f32.partialorder %v676_v24, 8.507059e+37 }
 0x153   : > { %v639_v8 = vsub.f32 0.0, %v635_v4  ;;  %v655_v9 = vmul.f32 %v966_v0, %v654_v5 }
 0x155   : > { %v968_v11 = vpop.eup %967  ;;  %v646_v12 = vmul.f32 1.442695, %v639_v8  ;;  %v656_v13 = vadd.f32 %v966_v0, %v655_v9 }
 0x156   : > { %v970_v14 = vpop.eup %969  ;;  %v650_v15 = vadd.f32 1.0, %v968_v11 }
 0x157   : > { %971 = vpow2.f32 %v646_v12  ;;  %v660_v17 = vsel %vm659_vm4, %v966_v0, %v656_v13  ;;  %v668_v18 = vmul.f32 %v970_v14, %v649_v1  ;;  %vm673_vm7 = vweird.f32 %v970_v14  ;;  %v960_v13 = vld [vmem:[%s1178_s7] ss:$0 sm:$0xff] }
 0x158   : > { %973 = vrcp.f32 %v650_v15  ;;  %v665_v19 = vsel %vm662_vm6, %v664_v16, %v660_v17  ;;  %vm674_vm9 = vmor %vm672_vm8, %vm673_vm7  ;;  %v693_v34 = vand.u32 2147483648, %v650_v15  ;;  %v691_v37 = vand.u32 2147483647, %v650_v15 }
 0x159   : > { %942 = vmatmul.msk.f32.vlgmr.msrb.gmra.mxu0 %vm713_vm5, %v665_v19  ;;  %v669_v20 = vsub.f32 1.0, %v668_v18  ;;  %vm687_vm12 = vweird.f32 %v650_v15  ;;  %v564_v56 = vpop.f32.mrf.mxu2 }
 0x15a   : > { %v694_v40 = vor.u32 1.1754944e-38, %v693_v34  ;;  %vm692_vm14 = vcmp.eq.f32.partialorder %v691_v37, 8.507059e+37 }
 0x15b   : > { %v670_v23 = vmul.f32 %v970_v14, %v669_v20 }
 0x15d   : > { %v972_v25 = vpop.eup %971  ;;  %v671_v26 = vadd.f32 %v970_v14, %v670_v23 }
 0x15e   : > { %v974_v27 = vpop.eup %973  ;;  %v651_v28 = vadd.f32 1.0, %v972_v25 }
 0x15f   : > { %v675_v30 = vsel %vm674_vm9, %v970_v14, %v671_v26  ;;  %v683_v31 = vmul.f32 %v974_v27, %v650_v15  ;;  %vm688_vm11 = vweird.f32 %v974_v27 }
 0x160   : > { %975 = vrcp.f32 %v651_v28  ;;  %v680_v32 = vsel %vm677_vm10, %v679_v29, %v675_v30  ;;  %vm689_vm13 = vmor %vm687_vm12, %vm688_vm11  ;;  %v708_v45 = vand.u32 2147483648, %v651_v28  ;;  %v706_v48 = vand.u32 2147483647, %v651_v28 }
 0x161   : > { %943 = vmatmul.msk.f32.gmra.mxu0 %vm713_vm5, %v680_v32  ;;  %v684_v33 = vsub.f32 1.0, %v683_v31  ;;  %vm702_vm1 = vweird.f32 %v651_v28  ;;  %v567_v57 = vpop.f32.mrf.mxu2 }
 0x162   : > { %v709_v50 = vor.u32 1.1754944e-38, %v708_v45  ;;  %vm707_vm3 = vcmp.eq.f32.partialorder %v706_v48, 8.507059e+37  ;;  %v759_v58 = vsub.f32 %v555_v53, %v567_v57 }
 0x163   : > { %v685_v36 = vmul.f32 %v974_v27, %v684_v33 }
 0x165   : > { %v686_v38 = vadd.f32 %v974_v27, %v685_v36 }
 0x166   : > { %v976_v39 = vpop.eup %975 }
 0x167   : > { %v690_v41 = vsel %vm689_vm13, %v974_v27, %v686_v38  ;;  %v698_v42 = vmul.f32 %v976_v39, %v651_v28  ;;  %vm703_vm15 = vweird.f32 %v976_v39 }
 0x168   : > { %v695_v43 = vsel %vm692_vm14, %v694_v40, %v690_v41  ;;  %vm704_vm2 = vmor %vm702_vm1, %vm703_vm15 }
 0x169   : > { %944 = vmatmul.msk.f32.gmra.mxu0 %vm713_vm5, %v695_v43  ;;  %v699_v44 = vsub.f32 1.0, %v698_v42  ;;  %v570_v59 = vpop.f32.mrf.mxu2 }
 0x16a   : > { %v760_v63 = vsub.f32 %v558_v54, %v570_v59 }
 0x16b   : > { %v700_v47 = vmul.f32 %v976_v39, %v699_v44 }
 0x16d   : > { %v701_v49 = vadd.f32 %v976_v39, %v700_v47 }
 0x16f   : > { %v705_v51 = vsel %vm704_vm2, %v976_v39, %v701_v49 }
 0x170   : > { %v710_v52 = vsel %vm707_vm3, %v709_v50, %v705_v51 }
 0x171   : > { %945 = vmatmul.msk.f32.gmra.mxu0 %vm713_vm5, %v710_v52  ;;  %v573_v2 = vpop.f32.mrf.mxu2 }
 0x172   : > { %v761_v4 = vsub.f32 %v561_v55, %v573_v2 }
 0x179   : > { %v576_v8 = vpop.f32.mrf.mxu2 }
 0x17a   : > { %v762_v9 = vsub.f32 %v564_v56, %v576_v8 }
 0x1d6   : > { %v747_v60 = vpop.f32.mrf.mxu0 }
 0x1d7   : > { %v763_v61 = vmul.f32 %v759_v58, %v747_v60 }
 0x1d9   : > { %v767_v62 = vadd.f32 %v763_v61, %v567_v57 }
 0x1db   : > { %946 = vmatmul.msk.f32.vlgmr.msrb.gmra.mxu3 %vm423_vm0, %v767_v62 }
 0x1de   : > { %v750_v0 = vpop.f32.mrf.mxu0 }
 0x1df   : > { %v764_v1 = vmul.f32 %v760_v63, %v750_v0 }
 0x1e1   : > { %v768_v3 = vadd.f32 %v764_v1, %v570_v59 }
 0x1e3   : > { %947 = vmatmul.msk.f32.gmra.mxu3 %vm423_vm0, %v768_v3 }
 0x1e6   : > { %v753_v5 = vpop.f32.mrf.mxu0 }
 0x1e7   : > { %v765_v6 = vmul.f32 %v761_v4, %v753_v5 }
 0x1e9   : > { %v769_v7 = vadd.f32 %v765_v6, %v573_v2 }
 0x1eb   : > { %948 = vmatmul.msk.f32.gmra.mxu3 %vm423_vm0, %v769_v7 }
 0x1ee   : > { %v756_v10 = vpop.f32.mrf.mxu0 }
 0x1ef   : > { %v766_v11 = vmul.f32 %v762_v9, %v756_v10 }
 0x1f1   : > { %v770_v12 = vadd.f32 %v766_v11, %v576_v8 }
 0x1f3   : > { %949 = vmatmul.msk.f32.gmra.mxu3 %vm423_vm0, %v770_v12 }
 0x25e   : > { %v808_v14 = vpop.f32.mrf.mxu3 }
 0x25f   : > { %v809_v15 = vadd.f32 %v960_v13, %v808_v14 }
 0x261   : > { %820 = vst.msk [vmem:[%s405_s17] sm:$0xff] %vm423_vm0, %v809_v15 }
 0x266   : > { %v811_v16 = vpop.f32.mrf.mxu3 }
 0x267   : > { %v812_v17 = vadd.f32 %v960_v13, %v811_v16 }
 0x269   : > { %821 = vst.msk [vmem:[%s405_s17 + $0x8] sm:$0xff] %vm423_vm0, %v812_v17 }
 0x26e   : > { %v814_v18 = vpop.f32.mrf.mxu3 }
 0x26f   : > { %v815_v19 = vadd.f32 %v960_v13, %v814_v18 }
 0x271   : > { %822 = vst.msk [vmem:[%s405_s17 + $0x10] sm:$0xff] %vm423_vm0, %v815_v19 }
 0x276   : > { %v817_v20 = vpop.f32.mrf.mxu3 }
 0x277   : > { %v818_v21 = vadd.f32 %v960_v13, %v817_v20 }
 0x279   : > { %823 = vst.msk [vmem:[%s405_s17 + $0x18] sm:$0xff] %vm423_vm0, %v818_v21 }
 0x27a PF: > { %s20_s13 = sadd.s32 1, %s983_s13  }
 0x27b   : > { %p17_p4 = scmp.ge.s32.totalorder %s20_s13, 4  }
 0x27d   :  { %19 = sbr.rel (!%p17_p4) target bundleno = 1 (0x1), region = 96 }

</bundles_post_ra>
